<compile_context>
chip_gen: v5e
topology: v5e:2x2
jax: 0.10.0
libtpu: 0.0.40
codegen_flags: <defaults>
</compile_context>

<pallas_src>
import functools

import jax
import jax.numpy as jnp
from jax import lax
from jax.experimental import pallas as pl
from jax.experimental.pallas import tpu as pltpu

SMOOTH_NR = 1e-5  # MONAI DiceLoss defaults
SMOOTH_DR = 1e-5

_LANE = 128
_TILE_HW_CAP = 8192  # lanes per grid step; keeps each pipelined step ~1-2 MiB


def _dice_ce_kernel(logits_ref, labels_ref, out_ref,
                    inter_acc, ground_acc, pred_acc, ce_acc,
                    *, hw_valid):
    """One HW tile of the streaming Dice + CE reduction.

    logits_ref: (B, C, T) logits (any float dtype; upcast to f32 in-kernel)
    labels_ref: (B, 1, T) int32 labels; padded lanes hold -1
    out_ref:    (1, 1) f32 SMEM scalar, written on the last grid step
    *_acc:      f32 VMEM accumulators persisting across the grid
    """
    k = pl.program_id(0)

    @pl.when(k == 0)
    def _init():
        inter_acc[...] = jnp.zeros_like(inter_acc)
        ground_acc[...] = jnp.zeros_like(ground_acc)
        pred_acc[...] = jnp.zeros_like(pred_acc)
        ce_acc[...] = jnp.zeros_like(ce_acc)

    x = logits_ref[...].astype(jnp.float32)          # (B, C, T)
    lab = labels_ref[...]                            # (B, 1, T) int32
    B, C, T = x.shape

    # One-hot over channels as a boolean mask (to_onehot_y=True); padded lanes
    # (label == -1) never match, and `valid` masks them out of the other sums.
    cls = lax.broadcasted_iota(jnp.int32, (B, C, T), 1)
    mask = lab == cls                                # (B, C, T) bool
    valid = lab >= 0                                 # (B, 1, T) bool

    # Numerically-stable softmax over the channel axis; reciprocal hoisted so the
    # divide happens once per pixel (B*T), not per element (B*C*T).
    m = jnp.max(x, axis=1, keepdims=True)            # (B, 1, T)
    e = jnp.exp(x - m)                               # (B, C, T)
    denom = jnp.sum(e, axis=1, keepdims=True)        # (B, 1, T)
    inv = 1.0 / denom                                # exact (1e-5 accuracy target)
    p = e * inv                                      # softmax probs

    # ---- Dice partial sums (per batch, per class) ----
    inter_acc[...] += jnp.sum(jnp.where(mask, p, 0.0), axis=2)       # (B, C)
    ground_acc[...] += jnp.sum(jnp.where(mask, 1.0, 0.0), axis=2)    # (B, C)
    pred_acc[...] += jnp.sum(jnp.where(valid, p, 0.0), axis=2)       # (B, C)

    # ---- Cross-entropy partial sum: logsumexp - target_logit per valid pixel ----
    lse = m + jnp.log(denom)                                          # (B, 1, T)
    tgt = jnp.sum(jnp.where(mask, x, 0.0), axis=1, keepdims=True)     # (B, 1, T)
    ce_acc[...] += jnp.sum(jnp.where(valid, lse - tgt, 0.0), axis=2)  # (B, 1)

    @pl.when(k == pl.num_programs(0) - 1)
    def _finalize():
        f = 1.0 - (2.0 * inter_acc[...] + SMOOTH_NR) / (
            ground_acc[...] + pred_acc[...] + SMOOTH_DR)              # (B, C)
        dice = jnp.sum(f) / (B * C)                  # mean over (batch, channel)
        ce = jnp.sum(ce_acc[...]) / (B * hw_valid)   # mean over real pixels only
        out_ref[0, 0] = dice + ce


def dice_ce_loss(y_pred, y_true):
    """y_pred: (B, C, H, W) float logits (f32 or bf16); y_true: (B, 1, H, W) int labels."""
    B, C, H, W = y_pred.shape
    HW = H * W

    logits = y_pred.reshape(B, C, HW)                # keep storage dtype; upcast in-kernel
    labels = y_true.reshape(B, 1, HW).astype(jnp.int32)

    # Lane tile: multiple of 128, capped so (2 inputs x 2 buffers) + in-kernel f32
    # temporaries stay well inside the scoped-VMEM default on v5e/v6e/v7x.
    if HW <= _TILE_HW_CAP:
        t_hw = ((HW + _LANE - 1) // _LANE) * _LANE
    else:
        t_hw = _TILE_HW_CAP
    hw_pad = ((HW + t_hw - 1) // t_hw) * t_hw
    if hw_pad != HW:
        logits = jnp.pad(logits, ((0, 0), (0, 0), (0, hw_pad - HW)))
        labels = jnp.pad(labels, ((0, 0), (0, 0), (0, hw_pad - HW)),
                         constant_values=-1)         # -1 => masked out in-kernel
    grid = (hw_pad // t_hw,)

    kernel = functools.partial(_dice_ce_kernel, hw_valid=HW)

    cost = pl.CostEstimate(
        flops=12 * B * C * hw_pad,
        transcendentals=B * C * hw_pad + 2 * B * hw_pad,   # exp + (log, recip) per pixel
        bytes_accessed=int(logits.size) * logits.dtype.itemsize
        + int(labels.size) * 4 + 4,
    )

    # TODO(synk): on v7x, add a leading "parallel" grid axis over batch (per-core
    # partial losses summed in the wrapper) to use both TensorCores.
    out = pl.pallas_call(
        kernel,
        out_shape=jax.ShapeDtypeStruct((1, 1), jnp.float32),
        grid=grid,
        in_specs=[
            pl.BlockSpec((B, C, t_hw), lambda k: (0, 0, k)),
            pl.BlockSpec((B, 1, t_hw), lambda k: (0, 0, k)),
        ],
        out_specs=pl.BlockSpec(memory_space=pltpu.MemorySpace.SMEM),
        scratch_shapes=[
            pltpu.VMEM((B, C), jnp.float32),   # intersection
            pltpu.VMEM((B, C), jnp.float32),   # ground_o
            pltpu.VMEM((B, C), jnp.float32),   # pred_o
            pltpu.VMEM((B, 1), jnp.float32),   # CE sum per batch
        ],
        compiler_params=pltpu.CompilerParams(dimension_semantics=("arbitrary",)),
        cost_estimate=cost,
    )(logits, labels)
    return out[0, 0]


def _reference(y_pred, y_true):
    """Pure-JAX reference matching MONAI DiceLoss + torch CrossEntropyLoss."""
    B, C, H, W = y_pred.shape
    x = y_pred.reshape(B, C, H * W).astype(jnp.float32)
    lab = y_true.reshape(B, H * W).astype(jnp.int32)
    p = jax.nn.softmax(x, axis=1)
    onehot = jax.nn.one_hot(lab, C, axis=1, dtype=jnp.float32)  # (B, C, HW)
    inter = jnp.sum(onehot * p, axis=2)
    ground = jnp.sum(onehot, axis=2)
    pred = jnp.sum(p, axis=2)
    dice = jnp.mean(1.0 - (2.0 * inter + SMOOTH_NR) / (ground + pred + SMOOTH_DR))
    logp = jax.nn.log_softmax(x, axis=1)
    ce = -jnp.mean(jnp.sum(onehot * logp, axis=1))
    return dice + ce


if __name__ == "__main__":
    key = jax.random.PRNGKey(0)

    # Small shape consistent with the module (single tile, no padding).
    k1, k2 = jax.random.split(key)
    B, C, H, W = 2, 4, 16, 16
    y_pred = jax.random.normal(k1, (B, C, H, W), dtype=jnp.float32)
    y_true = jax.random.randint(k2, (B, 1, H, W), 0, C, dtype=jnp.int32)

    loss = jax.block_until_ready(dice_ce_loss(y_pred, y_true))
    ref = jax.block_until_ready(_reference(y_pred, y_true))
    assert jnp.isfinite(loss), "loss is not finite"
    assert jnp.allclose(loss, ref, rtol=1e-5, atol=1e-5), (loss, ref)

    # Larger spatial shape exercising the multi-tile grid + padded/masked lanes.
    k3, k4 = jax.random.split(k2)
    B2, C2, H2, W2 = 1, 4, 96, 96        # HW = 9216 > 8192 -> 2 tiles, 7168 padded lanes
    y_pred2 = jax.random.normal(k3, (B2, C2, H2, W2), dtype=jnp.float32)
    y_true2 = jax.random.randint(k4, (B2, 1, H2, W2), 0, C2, dtype=jnp.int32)

    loss2 = jax.block_until_ready(dice_ce_loss(y_pred2, y_true2))
    ref2 = jax.block_until_ready(_reference(y_pred2, y_true2))
    assert jnp.isfinite(loss2), "loss2 is not finite"
    assert jnp.allclose(loss2, ref2, rtol=1e-5, atol=1e-5), (loss2, ref2)

    print("KERNEL_OK")
</pallas_src>

<mosaic_0001>
module attributes {stable_mosaic.version = 11 : i64} {
  func.func @_dice_ce_kernel(%arg0: i32, %arg1: memref<2x4x256xf32, #tpu.memory_space<vmem>>, %arg2: memref<2x1x256xi32, #tpu.memory_space<vmem>>, %arg3: memref<1x1xf32, #tpu.memory_space<smem>>, %arg4: memref<2x4xf32, #tpu.memory_space<vmem>>, %arg5: memref<2x4xf32, #tpu.memory_space<vmem>>, %arg6: memref<2x4xf32, #tpu.memory_space<vmem>>, %arg7: memref<2x1xf32, #tpu.memory_space<vmem>>) attributes {dimension_semantics = [#tpu.dimension_semantics<arbitrary>], iteration_bounds = array<i64: 1>, scalar_prefetch = 0 : i64, scratch_operands = 4 : i64, tpu.core_type = #tpu.core_type<tc>, window_params = [{transform_indices = @transform_0, window_bounds = array<i64: 2, 4, 256>}, {transform_indices = @transform_1, window_bounds = array<i64: 2, 1, 256>}, {transform_indices = @transform_2, window_bounds = array<i64: 1, 1>}]} {
    %c0_i32 = arith.constant 0 : i32
    %0 = arith.cmpi eq, %arg0, %c0_i32 : i32
    %1 = arith.extui %0 : i1 to i32
    %c0_i32_0 = arith.constant 0 : i32
    %2 = arith.cmpi ne, %1, %c0_i32_0 : i32
    scf.if %2 {
      %cst_38 = arith.constant 0.000000e+00 : f32
      %58 = vector.broadcast %cst_38 : f32 to vector<2x4xf32>
      %c0_39 = arith.constant 0 : index
      %c0_40 = arith.constant 0 : index
      %59 = vector.load %arg4[%c0_39, %c0_40] : memref<2x4xf32, #tpu.memory_space<vmem>>, vector<2x4xf32>
      tpu.vector_store %arg4[%c0_39, %c0_40], %58 {strides = array<i32>} : memref<2x4xf32, #tpu.memory_space<vmem>>, vector<2x4xf32>,
      %cst_41 = arith.constant 0.000000e+00 : f32
      %60 = vector.broadcast %cst_41 : f32 to vector<2x4xf32>
      %c0_42 = arith.constant 0 : index
      %c0_43 = arith.constant 0 : index
      %61 = vector.load %arg5[%c0_42, %c0_43] : memref<2x4xf32, #tpu.memory_space<vmem>>, vector<2x4xf32>
      tpu.vector_store %arg5[%c0_42, %c0_43], %60 {strides = array<i32>} : memref<2x4xf32, #tpu.memory_space<vmem>>, vector<2x4xf32>,
      %cst_44 = arith.constant 0.000000e+00 : f32
      %62 = vector.broadcast %cst_44 : f32 to vector<2x4xf32>
      %c0_45 = arith.constant 0 : index
      %c0_46 = arith.constant 0 : index
      %63 = vector.load %arg6[%c0_45, %c0_46] : memref<2x4xf32, #tpu.memory_space<vmem>>, vector<2x4xf32>
      tpu.vector_store %arg6[%c0_45, %c0_46], %62 {strides = array<i32>} : memref<2x4xf32, #tpu.memory_space<vmem>>, vector<2x4xf32>,
      %cst_47 = arith.constant 0.000000e+00 : f32
      %64 = vector.broadcast %cst_47 : f32 to vector<2x1xf32>
      %c0_48 = arith.constant 0 : index
      %c0_49 = arith.constant 0 : index
      %65 = vector.load %arg7[%c0_48, %c0_49] : memref<2x1xf32, #tpu.memory_space<vmem>>, vector<2x1xf32>
      tpu.vector_store %arg7[%c0_48, %c0_49], %64 {strides = array<i32>} : memref<2x1xf32, #tpu.memory_space<vmem>>, vector<2x1xf32>,
    } else {
    }
    %c0 = arith.constant 0 : index
    %c0_1 = arith.constant 0 : index
    %c0_2 = arith.constant 0 : index
    %3 = vector.load %arg1[%c0, %c0_1, %c0_2] : memref<2x4x256xf32, #tpu.memory_space<vmem>>, vector<2x4x256xf32>
    %c0_3 = arith.constant 0 : index
    %c0_4 = arith.constant 0 : index
    %c0_5 = arith.constant 0 : index
    %4 = vector.load %arg2[%c0_3, %c0_4, %c0_5] : memref<2x1x256xi32, #tpu.memory_space<vmem>>, vector<2x1x256xi32>
    %5 = tpu.iota {dimensions = array<i32: 1>} : vector<2x4x256xi32>
    %6 = vector.broadcast %4 : vector<2x1x256xi32> to vector<2x4x256xi32>
    %7 = arith.cmpi eq, %6, %5 : vector<2x4x256xi32>
    %c0_i32_6 = arith.constant 0 : i32
    %8 = vector.broadcast %c0_i32_6 : i32 to vector<2x1x256xi32>
    %9 = arith.cmpi sge, %4, %8 : vector<2x1x256xi32>
    %cst = arith.constant dense<0xFF800000> : vector<2x256xf32>
    %10 = vector.multi_reduction <maximumf>, %3, %cst [1] : vector<2x4x256xf32> to vector<2x256xf32>
    %11 = vector.shape_cast %10 : vector<2x256xf32> to vector<2x1x256xf32>
    %12 = vector.broadcast %11 : vector<2x1x256xf32> to vector<2x4x256xf32>
    %13 = arith.subf %3, %12 : vector<2x4x256xf32>
    %14 = math.exp %13 : vector<2x4x256xf32>
    %cst_7 = arith.constant dense<0.000000e+00> : vector<2x256xf32>
    %15 = vector.multi_reduction <add>, %14, %cst_7 [1] : vector<2x4x256xf32> to vector<2x256xf32>
    %16 = vector.shape_cast %15 : vector<2x256xf32> to vector<2x1x256xf32>
    %cst_8 = arith.constant 1.000000e+00 : f32
    %17 = vector.broadcast %cst_8 : f32 to vector<2x1x256xf32>
    %18 = arith.divf %17, %16 : vector<2x1x256xf32>
    %19 = vector.broadcast %18 : vector<2x1x256xf32> to vector<2x4x256xf32>
    %20 = arith.mulf %14, %19 : vector<2x4x256xf32>
    %c0_9 = arith.constant 0 : index
    %c0_10 = arith.constant 0 : index
    %21 = vector.load %arg4[%c0_9, %c0_10] : memref<2x4xf32, #tpu.memory_space<vmem>>, vector<2x4xf32>
    %cst_11 = arith.constant 0.000000e+00 : f32
    %22 = vector.broadcast %cst_11 : f32 to vector<2x4x256xf32>
    %23 = arith.select %7, %20, %22 : vector<2x4x256xi1>, vector<2x4x256xf32>
    %cst_12 = arith.constant dense<0.000000e+00> : vector<2x4xf32>
    %24 = vector.multi_reduction <add>, %23, %cst_12 [2] : vector<2x4x256xf32> to vector<2x4xf32>
    %25 = arith.addf %21, %24 : vector<2x4xf32>
    %c0_13 = arith.constant 0 : index
    %c0_14 = arith.constant 0 : index
    %26 = vector.load %arg4[%c0_13, %c0_14] : memref<2x4xf32, #tpu.memory_space<vmem>>, vector<2x4xf32>
    tpu.vector_store %arg4[%c0_13, %c0_14], %25 {strides = array<i32>} : memref<2x4xf32, #tpu.memory_space<vmem>>, vector<2x4xf32>,
    %c0_15 = arith.constant 0 : index
    %c0_16 = arith.constant 0 : index
    %27 = vector.load %arg5[%c0_15, %c0_16] : memref<2x4xf32, #tpu.memory_space<vmem>>, vector<2x4xf32>
    %cst_17 = arith.constant 1.000000e+00 : f32
    %cst_18 = arith.constant 0.000000e+00 : f32
    %28 = vector.broadcast %cst_17 : f32 to vector<2x4x256xf32>
    %29 = vector.broadcast %cst_18 : f32 to vector<2x4x256xf32>
    %30 = arith.select %7, %28, %29 : vector<2x4x256xi1>, vector<2x4x256xf32>
    %cst_19 = arith.constant dense<0.000000e+00> : vector<2x4xf32>
    %31 = vector.multi_reduction <add>, %30, %cst_19 [2] : vector<2x4x256xf32> to vector<2x4xf32>
    %32 = arith.addf %27, %31 : vector<2x4xf32>
    %c0_20 = arith.constant 0 : index
    %c0_21 = arith.constant 0 : index
    %33 = vector.load %arg5[%c0_20, %c0_21] : memref<2x4xf32, #tpu.memory_space<vmem>>, vector<2x4xf32>
    tpu.vector_store %arg5[%c0_20, %c0_21], %32 {strides = array<i32>} : memref<2x4xf32, #tpu.memory_space<vmem>>, vector<2x4xf32>,
    %c0_22 = arith.constant 0 : index
    %c0_23 = arith.constant 0 : index
    %34 = vector.load %arg6[%c0_22, %c0_23] : memref<2x4xf32, #tpu.memory_space<vmem>>, vector<2x4xf32>
    %cst_24 = arith.constant 0.000000e+00 : f32
    %35 = vector.shape_cast %9 : vector<2x1x256xi1> to vector<2x1x256xi1>
    %36 = vector.broadcast %35 : vector<2x1x256xi1> to vector<2x4x256xi1>
    %37 = vector.broadcast %cst_24 : f32 to vector<2x4x256xf32>
    %38 = arith.select %36, %20, %37 : vector<2x4x256xi1>, vector<2x4x256xf32>
    %cst_25 = arith.constant dense<0.000000e+00> : vector<2x4xf32>
    %39 = vector.multi_reduction <add>, %38, %cst_25 [2] : vector<2x4x256xf32> to vector<2x4xf32>
    %40 = arith.addf %34, %39 : vector<2x4xf32>
    %c0_26 = arith.constant 0 : index
    %c0_27 = arith.constant 0 : index
    %41 = vector.load %arg6[%c0_26, %c0_27] : memref<2x4xf32, #tpu.memory_space<vmem>>, vector<2x4xf32>
    tpu.vector_store %arg6[%c0_26, %c0_27], %40 {strides = array<i32>} : memref<2x4xf32, #tpu.memory_space<vmem>>, vector<2x4xf32>,
    %42 = math.log %16 : vector<2x1x256xf32>
    %43 = arith.addf %11, %42 : vector<2x1x256xf32>
    %cst_28 = arith.constant 0.000000e+00 : f32
    %44 = vector.broadcast %cst_28 : f32 to vector<2x4x256xf32>
    %45 = arith.select %7, %3, %44 : vector<2x4x256xi1>, vector<2x4x256xf32>
    %cst_29 = arith.constant dense<0.000000e+00> : vector<2x256xf32>
    %46 = vector.multi_reduction <add>, %45, %cst_29 [1] : vector<2x4x256xf32> to vector<2x256xf32>
    %47 = vector.shape_cast %46 : vector<2x256xf32> to vector<2x1x256xf32>
    %c0_30 = arith.constant 0 : index
    %c0_31 = arith.constant 0 : index
    %48 = vector.load %arg7[%c0_30, %c0_31] : memref<2x1xf32, #tpu.memory_space<vmem>>, vector<2x1xf32>
    %49 = arith.subf %43, %47 : vector<2x1x256xf32>
    %cst_32 = arith.constant 0.000000e+00 : f32
    %50 = vector.broadcast %cst_32 : f32 to vector<2x1x256xf32>
    %51 = arith.select %9, %49, %50 : vector<2x1x256xi1>, vector<2x1x256xf32>
    %cst_33 = arith.constant dense<0.000000e+00> : vector<2x1xf32>
    %52 = vector.multi_reduction <add>, %51, %cst_33 [2] : vector<2x1x256xf32> to vector<2x1xf32>
    %53 = arith.addf %48, %52 : vector<2x1xf32>
    %c0_34 = arith.constant 0 : index
    %c0_35 = arith.constant 0 : index
    %54 = vector.load %arg7[%c0_34, %c0_35] : memref<2x1xf32, #tpu.memory_space<vmem>>, vector<2x1xf32>
    tpu.vector_store %arg7[%c0_34, %c0_35], %53 {strides = array<i32>} : memref<2x1xf32, #tpu.memory_space<vmem>>, vector<2x1xf32>,
    %c0_i32_36 = arith.constant 0 : i32
    %55 = arith.cmpi eq, %arg0, %c0_i32_36 : i32
    %56 = arith.extui %55 : i1 to i32
    %c0_i32_37 = arith.constant 0 : i32
    %57 = arith.cmpi ne, %56, %c0_i32_37 : i32
    scf.if %57 {
      %c0_38 = arith.constant 0 : index
      %c0_39 = arith.constant 0 : index
      %58 = vector.load %arg4[%c0_38, %c0_39] : memref<2x4xf32, #tpu.memory_space<vmem>>, vector<2x4xf32>
      %cst_40 = arith.constant 2.000000e+00 : f32
      %59 = vector.broadcast %cst_40 : f32 to vector<2x4xf32>
      %60 = arith.mulf %59, %58 : vector<2x4xf32>
      %cst_41 = arith.constant 9.99999974E-6 : f32
      %61 = vector.broadcast %cst_41 : f32 to vector<2x4xf32>
      %62 = arith.addf %60, %61 : vector<2x4xf32>
      %c0_42 = arith.constant 0 : index
      %c0_43 = arith.constant 0 : index
      %63 = vector.load %arg5[%c0_42, %c0_43] : memref<2x4xf32, #tpu.memory_space<vmem>>, vector<2x4xf32>
      %c0_44 = arith.constant 0 : index
      %c0_45 = arith.constant 0 : index
      %64 = vector.load %arg6[%c0_44, %c0_45] : memref<2x4xf32, #tpu.memory_space<vmem>>, vector<2x4xf32>
      %65 = arith.addf %63, %64 : vector<2x4xf32>
      %cst_46 = arith.constant 9.99999974E-6 : f32
      %66 = vector.broadcast %cst_46 : f32 to vector<2x4xf32>
      %67 = arith.addf %65, %66 : vector<2x4xf32>
      %68 = arith.divf %62, %67 : vector<2x4xf32>
      %cst_47 = arith.constant 1.000000e+00 : f32
      %69 = vector.broadcast %cst_47 : f32 to vector<2x4xf32>
      %70 = arith.subf %69, %68 : vector<2x4xf32>
      %71 = vector.shape_cast %70 : vector<2x4xf32> to vector<1x2x4xf32>
      %cst_48 = arith.constant dense<0.000000e+00> : vector<1xf32>
      %72 = vector.multi_reduction <add>, %71, %cst_48 [1, 2] : vector<1x2x4xf32> to vector<1xf32>
      %73 = vector.shape_cast %72 : vector<1xf32> to vector<1x1x1xf32>
      %74 = vector.extract %73[0, 0, 0] : f32 from vector<1x1x1xf32>
      %cst_49 = arith.constant 8.000000e+00 : f32
      %75 = arith.divf %74, %cst_49 : f32
      %c0_50 = arith.constant 0 : index
      %c0_51 = arith.constant 0 : index
      %76 = vector.load %arg7[%c0_50, %c0_51] : memref<2x1xf32, #tpu.memory_space<vmem>>, vector<2x1xf32>
      %77 = vector.shape_cast %76 : vector<2x1xf32> to vector<1x2x1xf32>
      %cst_52 = arith.constant dense<0.000000e+00> : vector<1xf32>
      %78 = vector.multi_reduction <add>, %77, %cst_52 [1, 2] : vector<1x2x1xf32> to vector<1xf32>
      %79 = vector.shape_cast %78 : vector<1xf32> to vector<1x1x1xf32>
      %80 = vector.extract %79[0, 0, 0] : f32 from vector<1x1x1xf32>
      %cst_53 = arith.constant 5.120000e+02 : f32
      %81 = arith.divf %80, %cst_53 : f32
      %82 = arith.addf %75, %81 : f32
      %c0_54 = arith.constant 0 : index
      %c0_55 = arith.constant 0 : index
      %83 = memref.load %arg3[%c0_54, %c0_55] : memref<1x1xf32, #tpu.memory_space<smem>>
      memref.store %82, %arg3[%c0_54, %c0_55] : memref<1x1xf32, #tpu.memory_space<smem>>
    } else {
    }
    return
  }
  func.func @transform_0(%arg0: i32) -> (i32, i32, i32) {
    %c0_i32 = arith.constant 0 : i32
    %c0_i32_0 = arith.constant 0 : i32
    %c0_i32_1 = arith.constant 0 : i32
    return %c0_i32, %c0_i32_0, %arg0 : i32, i32, i32
  }
  func.func @transform_1(%arg0: i32) -> (i32, i32, i32) {
    %c0_i32 = arith.constant 0 : i32
    %c0_i32_0 = arith.constant 0 : i32
    %c0_i32_1 = arith.constant 0 : i32
    return %c0_i32, %c0_i32_0, %arg0 : i32, i32, i32
  }
  func.func @transform_2(%arg0: i32) -> (i32, i32) {
    %c0_i32 = arith.constant 0 : i32
    %c0_i32_0 = arith.constant 0 : i32
    %c0_i32_1 = arith.constant 0 : i32
    return %c0_i32, %c0_i32_0 : i32, i32
  }
}

</mosaic_0001>

<bundles_post_ra>
// kernel: tpu_custom_call.1
= control target key start
LH: loop header
LB: loop body
LE: loop exit
PB: predicated region body
PF: predicated region fallthrough
CT: control target
= control target key end

     0   :  { %7 = vsyncpa [#allocation7], 0  ;;  %s902_s0 = inlined_call_operand.hbm [shape: f32[2,4,256], index: 0, kind: input, shape index: {}]   ;;  %s903_s1 = inlined_call_operand.hbm [shape: s32[2,1,256], index: 1, kind: input, shape index: {}]   ;;  %s904_s2 = inlined_call_operand.hbm [shape: f32[1,1], index: 2, kind: output, shape index: {}]  }
   0x1   :  { %8 = vsyncpa [#allocation10], 0 }
   0x2   :  { %9 = vsyncpa [#allocation8], 0  ;;  %s14_s11 = sshll.u32 %s902_s0, 4  ;;  %s645_s12 = smov [#allocation6]   ;;  %s15_s11 = int_to_ptr.hbm [resolvable:$true] %s14_s11 }
   0x3   :  { %s16_s13 = sshll.u32 %s645_s12, 4  ;;  %s27_s16 = sshll.u32 %s903_s1, 4  ;;  %s17_s13 = int_to_ptr.vmem [resolvable:$true] %s16_s13  ;;  %s28_s16 = int_to_ptr.hbm [resolvable:$true] %s27_s16 }
   0x4   :  { %s646_s17 = smov 128   ;;  %s647_s18 = smov 8  }
   0x5   :  { %22 = dma.hbm_to_vmem [thread:$0]  %s15_s11, 256, %s17_s13, [#allocation7], %s646_s17, %s646_s17, %s647_s18  }
   0x6   :  { %s648_s19 = smov [#allocation9]   ;;  %s649_s21 = smov 32  }
   0x7   :  { %s29_s20 = sshll.u32 %s648_s19, 4  ;;  %s650_s22 = smov 2   ;;  %s30_s20 = int_to_ptr.vmem [resolvable:$true] %s29_s20 }
   0x8   :  { %35 = dma.hbm_to_vmem [thread:$0]  %s28_s16, 64, %s30_s20, [#allocation10], %s649_s21, %s649_s21, %s650_s22  }
   0x9   :  { %639 = dma.done.wait [#allocation7], 256  }
   0xa   :  { %640 = vsyncadd [#allocation7], 4294967040 }
   0xb   :  { %641 = dma.done.wait [#allocation10], 64  }
   0xc   :  { %642 = vsyncadd [#allocation10], 4294967232  ;;  %v58_v0 = vlaneseq  ;;  %v678_v2 = vld [vmem:[#allocation9] sm:$0x3]  ;;  %v680_v3 = vld [vmem:[#allocation9 + $0x2] sm:$0x3] }
   0xd   :  { %v682_v4 = vld [vmem:[#allocation6] sm:$0xff]  ;;  %v60_v5 = vperm.slane %v678_v2, 0  ;;  %v61_v6 = vperm.slane %v678_v2, 1  ;;  %v62_v7 = vperm.slane %v680_v3, 0  ;;  %v63_v8 = vperm.slane %v680_v3, 1  ;;  %v689_v9 = vld [vmem:[#allocation6 + $0x8] sm:$0xff] }
   0xe   :  { %v59_v1 = vshrl.u32 %v58_v0, 7  ;;  %72 = vst [vmem:[#allocation1] ss:$2 sm:$0xff] %v682_v4  ;;  %vm83_vm0 = vcmask 1043456   ;;  %v651_v14 = vmov 0.0   ;;  %s522_s28 = sshll.u32 %s904_s2, 4  ;;  %s523_s28 = int_to_ptr.hbm [resolvable:$true] %s522_s28 }
   0xf   :  { %76 = vst [vmem:[#allocation1 + $0x10] ss:$2 sm:$0xff] %v689_v9  ;;  %s655_s3 = smov [#allocation11]  }
  0x10   :  { %vm691_vm1 = vcmp.eq.s32.totalorder %v60_v5, %v59_v1  ;;  %vm695_vm2 = vcmp.eq.s32.totalorder %v61_v6, %v59_v1  ;;  %vm699_vm3 = vcmp.eq.s32.totalorder %v62_v7, %v59_v1  ;;  %vm703_vm4 = vcmp.eq.s32.totalorder %v63_v8, %v59_v1 }
  0x11   :  { %v282_v15 = vsel %vm691_vm1, 1.0, %v651_v14  ;;  %v283_v16 = vsel %vm695_vm2, 1.0, %v651_v14  ;;  %v284_v17 = vsel %vm699_vm3, 1.0, %v651_v14  ;;  %v285_v18 = vsel %vm703_vm4, 1.0, %v651_v14 }
  0x12   :  { %v286_v19 = vsel %vm83_vm0, %v282_v15, 0.0  ;;  %v287_v20 = vsel %vm83_vm0, %v283_v16, 0.0  ;;  %v291_v22 = vsel %vm83_vm0, %v284_v17, 0.0  ;;  %v292_v23 = vsel %vm83_vm0, %v285_v18, 0.0 }
  0x13   :  { %v288_v21 = vadd.f32 %v287_v20, %v286_v19  ;;  %v293_v31 = vadd.f32 %v292_v23, %v291_v22 }
  0x15   :  { %289 = vadd.xlane.f32.xlu0 %v288_v21  ;;  %v73_v24 = vld.sshfl [vmem:[#allocation1] sm:$0xff pattern:$0x75316420]  ;;  %v74_v25 = vld.sshfl [vmem:[#allocation1 + $0x8] sm:$0xff pattern:$0x75316420] }
  0x16   :  { %v84_v26 = vsel %vm83_vm0, %v73_v24, -inf  ;;  %v91_v27 = vsel %vm83_vm0, %v74_v25, -inf  ;;  %v77_v30 = vld.sshfl [vmem:[#allocation1 + $0x10] sm:$0xff pattern:$0x75316420] }
  0x17   :  { %v85_v28 = vrot.slane %v84_v26, 4  ;;  %v92_v29 = vrot.slane %v91_v27, 4  ;;  %v78_v32 = vld.sshfl [vmem:[#allocation1 + $0x18] sm:$0xff pattern:$0x75316420]  ;;  %v98_v33 = vsel %vm83_vm0, %v77_v30, -inf }
  0x18   :  { %v99_v36 = vrot.slane %v98_v33, 4  ;;  %v105_v37 = vsel %vm83_vm0, %v78_v32, -inf }
  0x19   :  { %v86_v34 = vmax.f32 %v84_v26, %v85_v28  ;;  %v93_v35 = vmax.f32 %v91_v27, %v92_v29  ;;  %v106_v38 = vrot.slane %v105_v37, 4 }
  0x1a   :  { %v100_v41 = vmax.f32 %v98_v33, %v99_v36 }
  0x1b   :  { %v87_v39 = vrot.slane %v86_v34, 2  ;;  %v94_v40 = vrot.slane %v93_v35, 2  ;;  %v107_v42 = vmax.f32 %v105_v37, %v106_v38 }
  0x1c   :  { %v101_v45 = vrot.slane %v100_v41, 2 }
  0x1d   :  { %294 = vadd.xlane.f32.xlu0 %v293_v31  ;;  %v88_v43 = vmax.f32 %v86_v34, %v87_v39  ;;  %v95_v44 = vmax.f32 %v93_v35, %v94_v40  ;;  %v108_v46 = vrot.slane %v107_v42, 2 }
  0x1e   :  { %v102_v49 = vmax.f32 %v100_v41, %v101_v45 }
  0x1f   :  { %v89_v47 = vrot.slane %v88_v43, 1  ;;  %v96_v48 = vrot.slane %v95_v44, 1  ;;  %v109_v50 = vmax.f32 %v107_v42, %v108_v46 }
  0x20   :  { %v103_v53 = vrot.slane %v102_v49, 1 }
  0x21   :  { %v728_v51 = vmax.f32 %v88_v43, %v89_v47  ;;  %v730_v52 = vmax.f32 %v95_v44, %v96_v48  ;;  %v110_v54 = vrot.slane %v109_v50, 1 }
  0x22   :  { %v733_v56 = vmax.f32 %v102_v49, %v103_v53 }
  0x23   :  { %v116_v55 = vrot.slane %v730_v52, 4  ;;  %v735_v57 = vmax.f32 %v109_v50, %v110_v54 }
  0x25   :  { %v118_v58 = vsel %vm83_vm0, %v728_v51, %v116_v55  ;;  %v117_v60 = vrot.slane %v735_v57, 4 }
  0x26   :  { %v122_v59 = vsub.f32 %v682_v4, %v118_v58 }
  0x27   :  { %v119_v62 = vsel %vm83_vm0, %v733_v56, %v117_v60 }
  0x28   :  { %v124_v61 = vmul.f32 1.442695, %v122_v59  ;;  %v123_v63 = vsub.f32 %v689_v9, %v119_v62 }
  0x2a   :  { %553 = vpow2.f32 %v124_v61  ;;  %v126_v1 = vmul.f32 1.442695, %v123_v63 }
  0x2c   :  { %555 = vpow2.f32 %v126_v1 }
  0x30   :  { %v744_v5 = vpop.eup %553 }
  0x31   :  { %130 = vst [vmem:[#allocation1] ss:$2 sm:$0xff] %v744_v5 }
  0x32   :  { %v747_v6 = vpop.eup %555 }
  0x33   :  { %134 = vst [vmem:[#allocation1 + $0x10] ss:$2 sm:$0xff] %v747_v6 }
  0x38   :  { %v131_v7 = vld.sshfl [vmem:[#allocation1] sm:$0xff pattern:$0x75316420]  ;;  %v132_v8 = vld.sshfl [vmem:[#allocation1 + $0x8] sm:$0xff pattern:$0x75316420] }
  0x39   :  { %v141_v15 = vsel %vm83_vm0, %v131_v7, 0.0  ;;  %v148_v16 = vsel %vm83_vm0, %v132_v8, 0.0 }
  0x3a   :  { %v142_v17 = vrot.slane %v141_v15, 4  ;;  %v149_v18 = vrot.slane %v148_v16, 4  ;;  %v135_v19 = vld.sshfl [vmem:[#allocation1 + $0x10] sm:$0xff pattern:$0x75316420] }
  0x3b   :  { %v136_v20 = vld.sshfl [vmem:[#allocation1 + $0x18] sm:$0xff pattern:$0x75316420]  ;;  %v155_v23 = vsel %vm83_vm0, %v135_v19, 0.0 }
  0x3c   :  { %v143_v21 = vadd.f32 %v142_v17, %v141_v15  ;;  %v150_v22 = vadd.f32 %v149_v18, %v148_v16  ;;  %v162_v24 = vsel %vm83_vm0, %v136_v20, 0.0  ;;  %v156_v25 = vrot.slane %v155_v23, 4 }
  0x3d   :  { %v163_v26 = vrot.slane %v162_v24, 4 }
  0x3e   :  { %v144_v27 = vrot.slane %v143_v21, 2  ;;  %v151_v28 = vrot.slane %v150_v22, 2  ;;  %v157_v29 = vadd.f32 %v156_v25, %v155_v23 }
  0x3f   :  { %v164_v30 = vadd.f32 %v163_v26, %v162_v24 }
  0x40   :  { %v145_v31 = vadd.f32 %v144_v27, %v143_v21  ;;  %v152_v32 = vadd.f32 %v151_v28, %v150_v22  ;;  %v158_v33 = vrot.slane %v157_v29, 2 }
  0x41   :  { %v165_v34 = vrot.slane %v164_v30, 2 }
  0x42   :  { %v146_v35 = vrot.slane %v145_v31, 1  ;;  %v153_v36 = vrot.slane %v152_v32, 1  ;;  %v159_v37 = vadd.f32 %v158_v33, %v157_v29 }
  0x43   :  { %v166_v38 = vadd.f32 %v165_v34, %v164_v30 }
  0x44   :  { %v754_v39 = vadd.f32 %v146_v35, %v145_v31  ;;  %v756_v40 = vadd.f32 %v153_v36, %v152_v32  ;;  %v160_v41 = vrot.slane %v159_v37, 1 }
  0x45   :  { %v167_v42 = vrot.slane %v166_v38, 1 }
  0x46   :  { %557 = vrcp.f32 %v754_v39  ;;  %v760_v43 = vadd.f32 %v160_v41, %v159_v37  ;;  %v178_v46 = vand.u32 2147483647, %v754_v39  ;;  %v180_v49 = vand.u32 2147483648, %v754_v39 }
  0x47   :  { %559 = vrcp.f32 %v756_v40  ;;  %v762_v44 = vadd.f32 %v167_v42, %v166_v38  ;;  %v193_v50 = vand.u32 2147483647, %v756_v40  ;;  %v195_v53 = vand.u32 2147483648, %v756_v40 }
  0x48   :  { %561 = vrcp.f32 %v760_v43  ;;  %vm174_vm5 = vweird.f32 %v754_v39  ;;  %vm773_vm7 = vcmp.eq.f32.partialorder %v178_v46, 8.507059e+37  ;;  %vm189_vm8 = vweird.f32 %v756_v40 }
  0x49   :  { %563 = vrcp.f32 %v762_v44  ;;  %v181_v62 = vor.u32 1.1754944e-38, %v180_v49  ;;  %vm778_vm10 = vcmp.eq.f32.partialorder %v193_v50, 8.507059e+37  ;;  %v196_v1 = vor.u32 1.1754944e-38, %v195_v53 }
  0x4a   :  { %vm204_vm12 = vweird.f32 %v760_v43  ;;  %v208_v17 = vand.u32 2147483647, %v760_v43  ;;  %v210_v20 = vand.u32 2147483648, %v760_v43  ;;  %vm219_vm14 = vweird.f32 %v762_v44 }
  0x4b   :  { %v225_v24 = vand.u32 2147483648, %v762_v44  ;;  %v223_v27 = vand.u32 2147483647, %v762_v44  ;;  %v652_v53 = vmov 0   ;;  %565 = vlog2.f32 %v756_v40 }
  0x4c   :  { %v558_v45 = vpop.eup %557  ;;  %v211_v35 = vor.u32 1.1754944e-38, %v210_v20  ;;  %567 = vlog2.f32 %v754_v39 }
  0x4d   :  { %v560_v47 = vpop.eup %559  ;;  %v170_v48 = vmul.f32 %v558_v45, %v754_v39  ;;  %vm175_vm6 = vweird.f32 %v558_v45  ;;  %v226_v36 = vor.u32 1.1754944e-38, %v225_v24  ;;  %569 = vlog2.f32 %v760_v43 }
  0x4e   :  { %v185_v54 = vmul.f32 %v560_v47, %v756_v40  ;;  %vm190_vm9 = vweird.f32 %v560_v47  ;;  %v562_v60 = vpop.eup %561  ;;  %vm782_vm11 = vmor %vm174_vm5, %vm175_vm6  ;;  %571 = vlog2.f32 %v762_v44 }
  0x4f   :  { %v171_v55 = vsub.f32 1.0, %v170_v48  ;;  %v564_v7 = vpop.eup %563  ;;  %v200_v16 = vmul.f32 %v562_v60, %v760_v43  ;;  %vm789_vm13 = vmor %vm189_vm8, %vm190_vm9  ;;  %vm205_vm15 = vweird.f32 %v562_v60  ;;  %vm209_vm9 = vcmp.eq.f32.partialorder %v208_v17, 8.507059e+37 }
  0x50   :  { %v186_v59 = vsub.f32 1.0, %v185_v54  ;;  %v215_v21 = vmul.f32 %v564_v7, %v762_v44  ;;  %vm220_vm5 = vweird.f32 %v564_v7  ;;  %vm206_vm6 = vmor %vm204_vm12, %vm205_vm15 }
  0x51   :  { %v172_v61 = vmul.f32 %v558_v45, %v171_v55  ;;  %v201_v23 = vsub.f32 1.0, %v200_v16  ;;  %vm221_vm8 = vmor %vm219_vm14, %vm220_vm5  ;;  %vm48_vm5 = vcmask 25600   ;;  %v566_v39 = vpop.eup %565 }
  0x52   :  { %v187_v15 = vmul.f32 %v560_v47, %v186_v59  ;;  %v216_v26 = vsub.f32 1.0, %v215_v21  ;;  %50 = vst.msk [vmem:[#allocation3] sm:$0x3] %vm48_vm5, %v651_v14 }
  0x53   :  { %v173_v18 = vadd.f32 %v558_v45, %v172_v61  ;;  %v202_v29 = vmul.f32 %v562_v60, %v201_v23  ;;  %49 = vst.msk [vmem:[#allocation2] sm:$0x3] %vm48_vm5, %v651_v14 }
  0x54   :  { %v188_v22 = vadd.f32 %v560_v47, %v187_v15  ;;  %v217_v32 = vmul.f32 %v564_v7, %v216_v26  ;;  %51 = vst.msk [vmem:[#allocation4] sm:$0x3] %vm48_vm5, %v651_v14 }
  0x55   :  { %v177_v25 = vsel %vm782_vm11, %v558_v45, %v173_v18  ;;  %v203_v34 = vadd.f32 %v562_v60, %v202_v29  ;;  %vm224_vm11 = vcmp.eq.f32.partialorder %v223_v27, 8.507059e+37 }
  0x56   :  { %v192_v28 = vsel %vm789_vm13, %v560_v47, %v188_v22  ;;  %v182_v30 = vsel %vm773_vm7, %v181_v62, %v177_v25  ;;  %v218_v37 = vadd.f32 %v564_v7, %v217_v32  ;;  %vm68_vm7 = vcmp.ge.s32.totalorder %v678_v2, 0 }
  0x57   :  { %v197_v31 = vsel %vm778_vm10, %v196_v1, %v192_v28  ;;  %v207_v41 = vsel %vm206_vm6, %v562_v60, %v203_v34  ;;  %v305_v54 = vsel %vm68_vm7, 1, %v652_v53  ;;  %vm69_vm10 = vcmp.ge.s32.totalorder %v680_v3, 0 }
  0x58   :  { %v233_v33 = vrot.slane %v197_v31, 4  ;;  %v222_v45 = vsel %vm221_vm8, %v564_v7, %v218_v37  ;;  %v212_v46 = vsel %vm209_vm9, %v211_v35, %v207_v41  ;;  %v307_v60 = vperm.slane %v305_v54, 0 }
  0x59   :  { %v227_v47 = vsel %vm224_vm11, %v226_v36, %v222_v45  ;;  %v308_v61 = vperm.slane %v305_v54, 1  ;;  %v306_v1 = vsel %vm69_vm10, 1, %v652_v53  ;;  %v568_v45 = vpop.eup %567  ;;  %v351_v54 = vmul.f32 0.6931472, %v566_v39 }
  0x5a   :  { %v235_v38 = vsel %vm83_vm0, %v182_v30, %v233_v33  ;;  %v234_v48 = vrot.slane %v227_v47, 4  ;;  %vm826_vm12 = vcmp.eq.s32.totalorder %v307_v60, 1  ;;  %v309_v19 = vperm.slane %v306_v1, 0 }
  0x5b   :  { %v239_v42 = vmul.f32 %v744_v5, %v235_v38  ;;  %vm830_vm13 = vcmp.eq.s32.totalorder %v308_v61, 1  ;;  %v310_v20 = vperm.slane %v306_v1, 1  ;;  %v349_v53 = vmul.f32 0.6931472, %v568_v45 }
  0x5c   :  { %v236_v49 = vsel %vm83_vm0, %v212_v46, %v234_v48  ;;  %vm313_vm14 = vcmp.eq.s32.totalorder %v309_v19, 1  ;;  %v357_v13 = vadd.f32 %v351_v54, %v730_v52  ;;  %v241_v54 = vld [vmem:[#allocation2] sm:$0x3] }
  0x5d   :  { %244 = vst [vmem:[#allocation1] ss:$2 sm:$0xff] %v239_v42  ;;  %v240_v50 = vmul.f32 %v747_v6, %v236_v49  ;;  %vm314_vm15 = vcmp.eq.s32.totalorder %v310_v20, 1 }
  0x5f   :  { %248 = vst [vmem:[#allocation1 + $0x10] ss:$2 sm:$0xff] %v240_v50 }
  0x64   :  { %v245_v55 = vld.sshfl [vmem:[#allocation1] sm:$0xff pattern:$0x75316420]  ;;  %v246_v58 = vld.sshfl [vmem:[#allocation1 + $0x8] sm:$0xff pattern:$0x75316420] }
  0x65   :  { %315 = vst [vmem:[#allocation1] ss:$2 sm:$0xff] %v239_v42  ;;  %v255_v5 = vsel %vm691_vm1, %v245_v55, 0.0  ;;  %v256_v59 = vsel %vm695_vm2, %v246_v58, 0.0 }
  0x66   :  { %v259_v6 = vsel %vm83_vm0, %v255_v5, 0.0  ;;  %v260_v62 = vsel %vm83_vm0, %v256_v59, 0.0  ;;  %v249_v7 = vld.sshfl [vmem:[#allocation1 + $0x10] sm:$0xff pattern:$0x75316420]  ;;  %v570_v59 = vpop.eup %569 }
  0x67   :  { %v261_v63 = vadd.f32 %v260_v62, %v259_v6  ;;  %v250_v8 = vld.sshfl [vmem:[#allocation1 + $0x18] sm:$0xff pattern:$0x75316420]  ;;  %v257_v17 = vsel %vm699_vm3, %v249_v7, 0.0  ;;  %v572_v6 = vpop.eup %571  ;;  %v356_v7 = vadd.f32 %v349_v53, %v728_v51  ;;  %v353_v16 = vmul.f32 0.6931472, %v570_v59 }
  0x68   :  { %319 = vst [vmem:[#allocation1 + $0x10] ss:$2 sm:$0xff] %v240_v50  ;;  %v258_v18 = vsel %vm703_vm4, %v250_v8, 0.0  ;;  %v264_v21 = vsel %vm83_vm0, %v257_v17, 0.0  ;;  %v355_v17 = vmul.f32 0.6931472, %v572_v6 }
  0x69   :  { %262 = vadd.xlane.f32.xlu2 %v261_v63  ;;  %v265_v22 = vsel %vm83_vm0, %v258_v18, 0.0 }
  0x6a   :  { %v266_v27 = vadd.f32 %v265_v22, %v264_v21 }
  0x6c   :  { %v316_v23 = vld.sshfl [vmem:[#allocation1] sm:$0xff pattern:$0x75316420]  ;;  %v317_v24 = vld.sshfl [vmem:[#allocation1 + $0x8] sm:$0xff pattern:$0x75316420] }
  0x6d   :  { %v326_v25 = vsel %vm826_vm12, %v316_v23, 0.0  ;;  %v327_v26 = vsel %vm830_vm13, %v317_v24, 0.0  ;;  %360 = vst [vmem:[#allocation1] ss:$2 sm:$0xff] %v682_v4 }
  0x6e   :  { %v330_v28 = vsel %vm83_vm0, %v326_v25, 0.0  ;;  %v331_v29 = vsel %vm83_vm0, %v327_v26, 0.0  ;;  %v358_v26 = vadd.f32 %v353_v16, %v733_v56  ;;  %v272_v56 = vand.u32 127, %v58_v0 }
  0x6f   :  { %v332_v30 = vadd.f32 %v331_v29, %v330_v28  ;;  %v320_v31 = vld.sshfl [vmem:[#allocation1 + $0x10] sm:$0xff pattern:$0x75316420]  ;;  %v321_v32 = vld.sshfl [vmem:[#allocation1 + $0x18] sm:$0xff pattern:$0x75316420] }
  0x70   :  { %v328_v33 = vsel %vm313_vm14, %v320_v31, 0.0  ;;  %v329_v34 = vsel %vm314_vm15, %v321_v32, 0.0  ;;  %364 = vst [vmem:[#allocation1 + $0x10] ss:$2 sm:$0xff] %v689_v9 }
  0x71   :  { %333 = vadd.xlane.f32.xlu1 %v332_v30  ;;  %267 = vadd.xlane.f32.xlu2 %v266_v27  ;;  %v335_v4 = vsel %vm83_vm0, %v328_v33, 0.0  ;;  %v336_v35 = vsel %vm83_vm0, %v329_v34, 0.0  ;;  %v359_v27 = vadd.f32 %v355_v17, %v735_v57 }
  0x72   :  { %v337_v38 = vadd.f32 %v336_v35, %v335_v4 }
  0x74   :  { %v361_v36 = vld.sshfl [vmem:[#allocation1] sm:$0xff pattern:$0x75316420]  ;;  %v362_v37 = vld.sshfl [vmem:[#allocation1 + $0x8] sm:$0xff pattern:$0x75316420] }
  0x75   :  { %v371_v40 = vsel %vm691_vm1, %v361_v36, 0.0  ;;  %v372_v41 = vsel %vm695_vm2, %v362_v37, 0.0  ;;  %vm275_vm1 = vcmask 1041409   ;;  %vm52_vm2 = vcmask 1024  }
  0x76   :  { %v375_v9 = vsel %vm83_vm0, %v371_v40, 0.0  ;;  %v382_v42 = vsel %vm83_vm0, %v372_v41, 0.0  ;;  %53 = vst.msk [vmem:[#allocation5] sm:$0x3] %vm52_vm2, %v651_v14 }
  0x77   :  { %v376_v10 = vrot.slane %v375_v9, 4  ;;  %v383_v46 = vrot.slane %v382_v42, 4  ;;  %v365_v11 = vld.sshfl [vmem:[#allocation1 + $0x10] sm:$0xff pattern:$0x75316420] }
  0x78   :  { %v366_v47 = vld.sshfl [vmem:[#allocation1 + $0x18] sm:$0xff pattern:$0x75316420]  ;;  %v373_v49 = vsel %vm699_vm3, %v365_v11, 0.0  ;;  %v281_v11 = vld [vmem:[#allocation3] sm:$0x3] }
  0x79   :  { %338 = vadd.xlane.f32.xlu1 %v337_v38  ;;  %v377_v48 = vadd.f32 %v376_v10, %v375_v9  ;;  %v384_v43 = vadd.f32 %v383_v46, %v382_v42  ;;  %v374_v50 = vsel %vm703_vm4, %v366_v47, 0.0  ;;  %v389_v44 = vsel %vm83_vm0, %v373_v49, 0.0 }
  0x7a   :  { %v396_v55 = vsel %vm83_vm0, %v374_v50, 0.0  ;;  %v390_v60 = vrot.slane %v389_v44, 4  ;;  %vm414_vm0 = vcmask 1040384  }
  0x7b   :  { %v378_v58 = vrot.slane %v377_v48, 2  ;;  %v385_v5 = vrot.slane %v384_v43, 2  ;;  %v397_v61 = vrot.slane %v396_v55, 4 }
  0x7c   :  { %v391_v1 = vadd.f32 %v390_v60, %v389_v44  ;;  %v304_v60 = vld [vmem:[#allocation4] sm:$0x3] }
  0x7d   :  { %v379_v62 = vadd.f32 %v378_v58, %v377_v48  ;;  %v386_v63 = vadd.f32 %v385_v5, %v384_v43  ;;  %v398_v12 = vadd.f32 %v397_v61, %v396_v55 }
  0x7e   :  { %v392_v18 = vrot.slane %v391_v1, 2 }
  0x7f   :  { %v380_v8 = vrot.slane %v379_v62, 1  ;;  %v387_v15 = vrot.slane %v386_v63, 1  ;;  %v399_v19 = vrot.slane %v398_v12, 2 }
  0x80   :  { %v393_v22 = vadd.f32 %v392_v18, %v391_v1  ;;  %v403_v18 = vld [vmem:[#allocation5] sm:$0x3] }
  0x81   :  { %v381_v20 = vadd.f32 %v380_v8, %v379_v62  ;;  %v388_v21 = vadd.f32 %v387_v15, %v386_v63  ;;  %v400_v23 = vadd.f32 %v399_v19, %v398_v12 }
  0x82   :  { %v394_v28 = vrot.slane %v393_v22, 1 }
  0x83   :  { %v404_v24 = vsub.f32 %v356_v7, %v381_v20  ;;  %v405_v25 = vsub.f32 %v357_v13, %v388_v21  ;;  %v401_v51 = vrot.slane %v400_v23, 1 }
  0x84   :  { %v395_v52 = vadd.f32 %v394_v28, %v393_v22 }
  0x85   :  { %v412_v29 = vrot.slane %v405_v25, 7  ;;  %v402_v30 = vadd.f32 %v401_v51, %v400_v23 }
  0x86   :  { %v406_v32 = vsub.f32 %v358_v26, %v395_v52 }
  0x87   :  { %v415_v31 = vsel %vm414_vm0, %v404_v24, %v412_v29  ;;  %v407_v33 = vsub.f32 %v359_v27, %v402_v30 }
  0x88   :  { %v419_v34 = vsel %vm68_vm7, %v415_v31, 0.0  ;;  %v290_v4 = vpop.xlane.xlu0 %289 }
  0x89   :  { %v423_v35 = vperm.slane %v419_v34, 0  ;;  %v424_v36 = vperm.slane %v419_v34, 1  ;;  %v413_v37 = vrot.slane %v407_v33, 7  ;;  %v298_v2 = vperm.slane %v290_v4, %v272_v56 }
  0x8a   :  { %v653_v34 = vmov 8.0   ;;  %v654_v4 = vmov 512.0  }
  0x8b   :  { %v431_v57 = vsel %vm414_vm0, %v423_v35, 0.0  ;;  %v432_v38 = vsel %vm414_vm0, %v424_v36, 0.0  ;;  %v416_v40 = vsel %vm414_vm0, %v406_v32, %v413_v37 }
  0x8c   :  { %v433_v41 = vadd.f32 %v432_v38, %v431_v57  ;;  %v420_v39 = vsel %vm69_vm10, %v416_v40, 0.0 }
  0x8d   :  { %v425_v9 = vperm.slane %v420_v39, 0  ;;  %v426_v42 = vperm.slane %v420_v39, 1 }
  0x8e   :  { %434 = vadd.xlane.f32.xlu1 %v433_v41 }
  0x8f   :  { %v436_v45 = vsel %vm414_vm0, %v425_v9, 0.0  ;;  %v437_v10 = vsel %vm414_vm0, %v426_v42, 0.0 }
  0x90   :  { %v295_v0 = vpop.xlane.xlu0 %294  ;;  %v438_v46 = vadd.f32 %v437_v10, %v436_v45 }
  0x91   :  { %v299_v47 = vperm.slane %v295_v0, %v272_v56 }
  0x92   :  { %439 = vadd.xlane.f32.xlu0 %v438_v46 }
  0x93   :  { %v300_v48 = vsel %vm275_vm1, %v299_v47, %v298_v2 }
  0x94   :  { %v302_v43 = vadd.f32 %v300_v48, %v281_v11 }
  0x96   :  { %303 = vst.msk [vmem:[#allocation3] sm:$0x3] %vm48_vm5, %v302_v43 }
  0x9d   :  { %v455_v14 = vld [vmem:[#allocation3] sm:$0x3] }
  0xdc   :  { %v263_v3 = vpop.xlane.xlu2 %262 }
  0xdd   :  { %v273_v49 = vperm.slane %v263_v3, %v272_v56 }
  0xe4   :  { %v334_v50 = vpop.xlane.xlu1 %333  ;;  %v268_v53 = vpop.xlane.xlu2 %267 }
  0xe5   :  { %v274_v44 = vperm.slane %v268_v53, %v272_v56  ;;  %v342_v59 = vperm.slane %v334_v50, %v272_v56 }
  0xe7   :  { %v276_v55 = vsel %vm275_vm1, %v274_v44, %v273_v49 }
  0xe8   :  { %v278_v58 = vadd.f32 %v276_v55, %v241_v54 }
  0xea   :  { %280 = vst.msk [vmem:[#allocation2] sm:$0x3] %vm48_vm5, %v278_v58 }
  0xec   :  { %v339_v5 = vpop.xlane.xlu1 %338 }
  0xed   :  { %v343_v61 = vperm.slane %v339_v5, %v272_v56 }
  0xef   :  { %v344_v6 = vsel %vm275_vm1, %v343_v61, %v342_v59 }
  0xf0   :  { %v346_v62 = vadd.f32 %v344_v6, %v304_v60 }
  0xf1   :  { %v452_v13 = vld [vmem:[#allocation2] sm:$0x3] }
  0xf2   :  { %347 = vst.msk [vmem:[#allocation4] sm:$0x3] %vm48_vm5, %v346_v62  ;;  %v453_v20 = vmul.f32 2.0, %v452_v13 }
  0xf4   :  { %v454_v28 = vadd.f32 1e-05, %v453_v20 }
  0xf9   :  { %v456_v63 = vld [vmem:[#allocation4] sm:$0x3] }
  0xfa   :  { %v457_v1 = vadd.f32 %v456_v63, %v455_v14 }
  0xfc   :  { %v458_v12 = vadd.f32 1e-05, %v457_v1 }
  0xfe   :  { %573 = vrcp.f32 %v458_v12  ;;  %v470_v21 = vand.u32 2147483648, %v458_v12  ;;  %v468_v24 = vand.u32 2147483647, %v458_v12  ;;  %vm464_vm4 = vweird.f32 %v458_v12 }
  0xff   :  { %575 = vrcp.f32 %v653_v34 }
 0x100   :  { %v471_v27 = vor.u32 1.1754944e-38, %v470_v21  ;;  %vm469_vm8 = vcmp.eq.f32.partialorder %v468_v24, 8.507059e+37  ;;  %577 = vrcp.f32 %v654_v4 }
 0x101   :  { %v435_v16 = vpop.xlane.xlu1 %434 }
 0x104   :  { %v574_v7 = vpop.eup %573 }
 0x105   :  { %v460_v8 = vmul.f32 %v574_v7, %v458_v12  ;;  %v440_v15 = vpop.xlane.xlu0 %439  ;;  %vm465_vm3 = vweird.f32 %v574_v7  ;;  %v576_v35 = vpop.eup %575 }
 0x106   :  { %v443_v17 = vrot.slane %v440_v15, 7  ;;  %vm466_vm6 = vmor %vm464_vm4, %vm465_vm3  ;;  %v578_v36 = vpop.eup %577  ;;  %v486_v37 = vmul.f32 8.0, %v576_v35  ;;  %vm490_vm9 = vweird.f32 %v576_v35 }
 0x107   :  { %v461_v19 = vsub.f32 1.0, %v460_v8  ;;  %v506_v56 = vmul.f32 512.0, %v578_v36  ;;  %vm510_vm11 = vweird.f32 %v578_v36 }
 0x108   :  { %v444_v22 = vsel %vm275_vm1, %v443_v17, %v435_v16  ;;  %v487_v57 = vsub.f32 1.0, %v486_v37 }
 0x109   :  { %v462_v23 = vmul.f32 %v574_v7, %v461_v19  ;;  %v446_v25 = vadd.f32 %v444_v22, %v403_v18  ;;  %v507_v39 = vsub.f32 1.0, %v506_v56 }
 0x10a   :  { %v488_v2 = vmul.f32 %v576_v35, %v487_v57 }
 0x10b   :  { %v463_v26 = vadd.f32 %v574_v7, %v462_v23  ;;  %448 = vst.msk [vmem:[#allocation5] sm:$0x3] %vm52_vm2, %v446_v25  ;;  %v508_v0 = vmul.f32 %v578_v36, %v507_v39 }
 0x10c   :  { %v489_v47 = vadd.f32 %v576_v35, %v488_v2 }
 0x10d   :  { %v467_v51 = vsel %vm466_vm6, %v574_v7, %v463_v26  ;;  %v509_v3 = vadd.f32 %v578_v36, %v508_v0 }
 0x10e   :  { %v472_v29 = vsel %vm469_vm8, %v471_v27, %v467_v51  ;;  %v491_v53 = vsel %vm490_vm9, %v576_v35, %v489_v47 }
 0x10f   :  { %v473_v52 = vmul.f32 %v472_v29, %v454_v28  ;;  %v511_v44 = vsel %vm510_vm11, %v578_v36, %v509_v3 }
 0x111   :  { %v474_v30 = vsub.f32 1.0, %v473_v52 }
 0x112   :  { %v494_v31 = vld [vmem:[#allocation5] sm:$0x3] }
 0x113   :  { %v475_v32 = vsel %vm48_vm5, %v474_v30, 0.0  ;;  %v495_v33 = vsel %vm52_vm2, %v494_v31, 0.0 }
 0x114   :  { %476 = vadd.xlane.f32.xlu2 %v475_v32  ;;  %496 = vadd.xlane.f32.xlu0 %v495_v33 }
 0x187   :  { %v477_v38 = vpop.xlane.xlu2 %476  ;;  %v497_v40 = vpop.xlane.xlu0 %496 }
 0x188   :  { %v478_v41 = vrot.slane %v477_v38, 4  ;;  %v498_v9 = vrot.slane %v497_v40, 4 }
 0x18a   :  { %v479_v42 = vadd.f32 %v478_v41, %v477_v38  ;;  %v499_v45 = vadd.f32 %v498_v9, %v497_v40 }
 0x18c   :  { %v480_v10 = vrot.slane %v479_v42, 2  ;;  %v500_v46 = vrot.slane %v499_v45, 2 }
 0x18e   :  { %v481_v11 = vadd.f32 %v480_v10, %v479_v42  ;;  %v501_v48 = vadd.f32 %v500_v46, %v499_v45 }
 0x190   :  { %v482_v43 = vrot.slane %v481_v11, 1  ;;  %v502_v49 = vrot.slane %v501_v48, 1 }
 0x192   :  { %v483_v50 = vadd.f32 %v482_v43, %v481_v11  ;;  %v503_v54 = vadd.f32 %v502_v49, %v501_v48 }
 0x194   :  { %534 = vpush %v483_v50 }
 0x195   :  { %536 = vpush %v491_v53 }
 0x196   :  { %538 = vpush %v503_v54 }
 0x197   :  { %540 = vpush %v511_v44 }
 0x1c5   :  { %s535_s0 = spop %534 }
 0x1c6   :  { %s537_s1 = spop %536 }
 0x1c7   :  { %s493_s23 = smul.f32 %s537_s1, %s535_s0  ;;  %s539_s24 = spop %538 }
 0x1c8   :  { %s541_s25 = spop %540 }
 0x1c9   :  { %s513_s29 = smul.f32 %s541_s25, %s539_s24 }
 0x1cb   :  { %s514_s30 = sadd.f32 %s513_s29, %s493_s23 }
 0x1cd   :  { %516 = sst [smem:[#allocation11]] %s514_s30 }
 0x1ce   :  { %525 = dma.smem_to_hbm %s655_s3, 16, %s523_s28, [#allocation8]  }
 0x1cf   :  { %643 = dma.done.wait [#allocation8], 16  }
 0x1d0   :  { %644 = vsyncadd [#allocation8], 4294967280 }
 0x1d1   :  { %530 = sfence }
 0x1d2   :  { %531 = vsyncpa [#allocation7], 1 }
 0x1d3   :  { %532 = vsyncpa [#allocation10], 1 }
 0x1d4   :  { %533 = vsyncpa [#allocation8], 1 }

</bundles_post_ra>
